<compile_context>
chip_gen: v5e
topology: v5e:2x2
jax: 0.10.0
libtpu: 0.0.40
codegen_flags: <defaults>
</compile_context>

<pallas_src>
import jax
import jax.numpy as jnp
from jax.experimental import pallas as pl
from jax.experimental.pallas import tpu as pltpu

EMB_DIM = 3
NUM_EMBEDDINGS = (5, 7, 4, 6)   # deterministic stand-ins for len(dataset_full.labels[i])
NUM_NUMERIC = 3                 # x has 3 numeric features (7 - 4 categorical)
H1, H2, H3 = 5, 3, 1            # Linear(15->5), Linear(5->3), Linear(3->1)
TOTAL_V = sum(NUM_EMBEDDINGS)   # 22 (concatenated vocabulary)

_offsets = []
_acc = 0
for _v in NUM_EMBEDDINGS:
    _offsets.append(_acc)
    _acc += _v
OFFSETS = tuple(_offsets)       # (0, 5, 12, 16)

TB_MAX = 2048                   # batch tile (lanes); sized well under v7x 64 MiB VMEM


def _round_up(n, m):
    return (n + m - 1) // m * m


def model_kernel(xt_ref, xct_ref,
                 w1n_ref, ft_ref, b1_ref,
                 w2_ref, b2_ref, w3_ref, b3_ref,
                 o_ref):
    # Feature-major blocks: xt (3, TB) f32, xct (4, TB) i32, o (1, TB) f32.
    tb = xt_ref.shape[1]
    xt = xt_ref[...]
    xct = xct_ref[...]

    # Single shared sublane-iota over the concatenated vocabulary; the four
    # category columns are offset into disjoint ranges, so OR-ing the compares
    # yields one multi-hot (22, TB) with exactly 4 ones per column.
    iota = jax.lax.broadcasted_iota(jnp.int32, (TOTAL_V, tb), 0)
    hot = None
    for i, off in enumerate(OFFSETS):
        adj = xct[i:i + 1, :] + off                 # (1, TB)
        m = iota == adj                             # (22, TB) bool
        hot = m if hot is None else (hot | m)
    multihot = hot.astype(jnp.float32)              # (22, TB)

    # Layer 1: numeric matmul + folded-embedding matmul (replaces gathers+concat).
    h1 = jnp.dot(w1n_ref[...], xt, preferred_element_type=jnp.float32)          # (5, TB)
    h1 = h1 + jnp.dot(ft_ref[...], multihot, preferred_element_type=jnp.float32)
    h1 = jnp.maximum(h1 + b1_ref[...], 0.0)

    # Layer 2 + ReLU.
    h2 = jnp.maximum(
        jnp.dot(w2_ref[...], h1, preferred_element_type=jnp.float32) + b2_ref[...], 0.0)  # (3, TB)

    # Layer 3 -> lane-dense (1, TB) output block.
    o_ref[...] = (
        jnp.dot(w3_ref[...], h2, preferred_element_type=jnp.float32) + b3_ref[...])


def model_forward(x, x_c, params, *, tb_max=TB_MAX):
    B = x.shape[0]
    (e0, e1, e2, e3, w1, b1, w2, b2, w3, b3) = params

    # --- fold the 4 embedding tables into layer 1 (done once, outside the kernel) ---
    tables = (e0, e1, e2, e3)
    folded = [tables[i] @ w1[NUM_NUMERIC + EMB_DIM * i: NUM_NUMERIC + EMB_DIM * (i + 1), :]
              for i in range(4)]                       # each (V_i, H1)
    ft = jnp.concatenate(folded, axis=0).T             # (H1, 22)
    w1n = w1[:NUM_NUMERIC, :].T                        # (H1, 3)
    b1t = b1.reshape(H1, 1)
    w2t = w2.T                                         # (H2, H1)
    b2t = b2.reshape(H2, 1)
    w3t = w3.T                                         # (H3, H2)
    b3t = b3.reshape(H3, 1)

    # --- feature-major (batch-on-lanes) inputs, padded to the batch tile ---
    tb = min(tb_max, _round_up(B, 128))
    Bp = _round_up(B, tb)
    xt = jnp.zeros((NUM_NUMERIC, Bp), jnp.float32).at[:, :B].set(x.T)
    xct = jnp.zeros((4, Bp), jnp.int32).at[:, :B].set(x_c.T)   # pad idx 0: benign, sliced off

    batch_spec = lambda shape: pl.BlockSpec(shape, lambda i: (0, i))
    weight_spec = lambda shape: pl.BlockSpec(shape, lambda i: (0, 0))  # resident across steps

    out = pl.pallas_call(
        model_kernel,
        out_shape=jax.ShapeDtypeStruct((H3, Bp), jnp.float32),
        grid=(Bp // tb,),
        in_specs=[
            batch_spec((NUM_NUMERIC, tb)),   # x^T
            batch_spec((4, tb)),             # x_c^T
            weight_spec((H1, NUM_NUMERIC)),  # W1 numeric slice (transposed)
            weight_spec((H1, TOTAL_V)),      # folded embedding table (transposed)
            weight_spec((H1, 1)),            # b1
            weight_spec((H2, H1)),           # W2^T
            weight_spec((H2, 1)),            # b2
            weight_spec((H3, H2)),           # W3^T
            weight_spec((H3, 1)),            # b3
        ],
        out_specs=batch_spec((H3, tb)),
        compiler_params=pltpu.CompilerParams(dimension_semantics=("parallel",)),
    )(xt, xct, w1n, ft, b1t, w2t, b2t, w3t, b3t)

    return out[:, :B].T                                # (B, 1)


def make_params(key):
    keys = jax.random.split(key, 10)
    in_feats = NUM_NUMERIC + EMB_DIM * len(NUM_EMBEDDINGS)   # 15
    embs = [jax.random.normal(keys[i], (NUM_EMBEDDINGS[i], EMB_DIM), jnp.float32)
            for i in range(4)]
    # Linear weights stored (in, out) = transposed PyTorch layout
    w1 = jax.random.normal(keys[4], (in_feats, H1), jnp.float32) * 0.3
    b1 = jax.random.normal(keys[5], (1, H1), jnp.float32) * 0.1
    w2 = jax.random.normal(keys[6], (H1, H2), jnp.float32) * 0.3
    b2 = jax.random.normal(keys[7], (1, H2), jnp.float32) * 0.1
    w3 = jax.random.normal(keys[8], (H2, H3), jnp.float32) * 0.3
    b3 = jax.random.normal(keys[9], (1, H3), jnp.float32) * 0.1
    return (*embs, w1, b1, w2, b2, w3, b3)


def reference_forward(x, x_c, params):
    (e0, e1, e2, e3, w1, b1, w2, b2, w3, b3) = params
    tables = (e0, e1, e2, e3)
    x_e = jnp.concatenate([tables[i][x_c[:, i]] for i in range(4)], axis=-1)
    h = jnp.concatenate([x, x_e], axis=-1)
    h = jnp.maximum(h @ w1 + b1, 0.0)
    h = jnp.maximum(h @ w2 + b2, 0.0)
    return h @ w3 + b3


if __name__ == "__main__":
    key = jax.random.PRNGKey(0)
    k_x, k_c, k_p = jax.random.split(key, 3)
    params = make_params(k_p)

    # Small batch (single tile) and a larger batch (multi-step grid + padded tail).
    for B in (8, 2500):
        kx = jax.random.fold_in(k_x, B)
        kc = jax.random.fold_in(k_c, B)
        x = jax.random.normal(kx, (B, NUM_NUMERIC), jnp.float32)
        x_c = jnp.stack(
            [jax.random.randint(jax.random.fold_in(kc, i), (B,), 0, NUM_EMBEDDINGS[i])
             for i in range(4)],
            axis=-1).astype(jnp.int32)                            # (B, 4)

        y = model_forward(x, x_c, params)
        y = jax.block_until_ready(y)

        y_ref = reference_forward(x, x_c, params)
        assert y.shape == (B, 1)
        assert jnp.allclose(y, y_ref, atol=1e-4, rtol=1e-4), f"mismatch vs JAX reference (B={B})"

    print("KERNEL_OK")
</pallas_src>

<mosaic_0001>
module attributes {stable_mosaic.version = 11 : i64} {
  func.func @model_kernel(%arg0: i32, %arg1: memref<3x128xf32, #tpu.memory_space<vmem>>, %arg2: memref<4x128xi32, #tpu.memory_space<vmem>>, %arg3: memref<5x3xf32, #tpu.memory_space<vmem>>, %arg4: memref<5x22xf32, #tpu.memory_space<vmem>>, %arg5: memref<5x1xf32, #tpu.memory_space<vmem>>, %arg6: memref<3x5xf32, #tpu.memory_space<vmem>>, %arg7: memref<3x1xf32, #tpu.memory_space<vmem>>, %arg8: memref<1x3xf32, #tpu.memory_space<vmem>>, %arg9: memref<1x1xf32, #tpu.memory_space<vmem>>, %arg10: memref<1x128xf32, #tpu.memory_space<vmem>>) attributes {dimension_semantics = [#tpu.dimension_semantics<parallel>], iteration_bounds = array<i64: 1>, scalar_prefetch = 0 : i64, scratch_operands = 0 : i64, tpu.core_type = #tpu.core_type<tc>, window_params = [{transform_indices = @transform_0, window_bounds = array<i64: 3, 128>}, {transform_indices = @transform_1, window_bounds = array<i64: 4, 128>}, {pipeline_mode = #tpu.pipeline_mode<synchronous>, transform_indices = @transform_2, window_bounds = array<i64: 5, 3>}, {pipeline_mode = #tpu.pipeline_mode<synchronous>, transform_indices = @transform_3, window_bounds = array<i64: 5, 22>}, {pipeline_mode = #tpu.pipeline_mode<synchronous>, transform_indices = @transform_4, window_bounds = array<i64: 5, 1>}, {pipeline_mode = #tpu.pipeline_mode<synchronous>, transform_indices = @transform_5, window_bounds = array<i64: 3, 5>}, {pipeline_mode = #tpu.pipeline_mode<synchronous>, transform_indices = @transform_6, window_bounds = array<i64: 3, 1>}, {pipeline_mode = #tpu.pipeline_mode<synchronous>, transform_indices = @transform_7, window_bounds = array<i64: 1, 3>}, {pipeline_mode = #tpu.pipeline_mode<synchronous>, transform_indices = @transform_8, window_bounds = array<i64: 1, 1>}, {transform_indices = @transform_9, window_bounds = array<i64: 1, 128>}]} {
    %c0 = arith.constant 0 : index
    %c0_0 = arith.constant 0 : index
    %0 = vector.load %arg1[%c0, %c0_0] : memref<3x128xf32, #tpu.memory_space<vmem>>, vector<3x128xf32>
    %c0_1 = arith.constant 0 : index
    %c0_2 = arith.constant 0 : index
    %1 = vector.load %arg2[%c0_1, %c0_2] : memref<4x128xi32, #tpu.memory_space<vmem>>, vector<4x128xi32>
    %2 = tpu.iota {dimensions = array<i32: 0>} : vector<22x128xi32>
    %3 = vector.extract_strided_slice %1 {offsets = [0, 0], sizes = [1, 128], strides = [1, 1]} : vector<4x128xi32> to vector<1x128xi32>
    %c0_i32 = arith.constant 0 : i32
    %4 = vector.broadcast %c0_i32 : i32 to vector<1x128xi32>
    %5 = arith.addi %3, %4 : vector<1x128xi32>
    %6 = vector.broadcast %5 : vector<1x128xi32> to vector<22x128xi32>
    %7 = arith.cmpi eq, %2, %6 : vector<22x128xi32>
    %8 = vector.extract_strided_slice %1 {offsets = [1, 0], sizes = [1, 128], strides = [1, 1]} : vector<4x128xi32> to vector<1x128xi32>
    %c5_i32 = arith.constant 5 : i32
    %9 = vector.broadcast %c5_i32 : i32 to vector<1x128xi32>
    %10 = arith.addi %8, %9 : vector<1x128xi32>
    %11 = vector.broadcast %10 : vector<1x128xi32> to vector<22x128xi32>
    %12 = arith.cmpi eq, %2, %11 : vector<22x128xi32>
    %13 = arith.ori %7, %12 : vector<22x128xi1>
    %14 = vector.extract_strided_slice %1 {offsets = [2, 0], sizes = [1, 128], strides = [1, 1]} : vector<4x128xi32> to vector<1x128xi32>
    %c12_i32 = arith.constant 12 : i32
    %15 = vector.broadcast %c12_i32 : i32 to vector<1x128xi32>
    %16 = arith.addi %14, %15 : vector<1x128xi32>
    %17 = vector.broadcast %16 : vector<1x128xi32> to vector<22x128xi32>
    %18 = arith.cmpi eq, %2, %17 : vector<22x128xi32>
    %19 = arith.ori %13, %18 : vector<22x128xi1>
    %20 = vector.extract_strided_slice %1 {offsets = [3, 0], sizes = [1, 128], strides = [1, 1]} : vector<4x128xi32> to vector<1x128xi32>
    %c16_i32 = arith.constant 16 : i32
    %21 = vector.broadcast %c16_i32 : i32 to vector<1x128xi32>
    %22 = arith.addi %20, %21 : vector<1x128xi32>
    %23 = vector.broadcast %22 : vector<1x128xi32> to vector<22x128xi32>
    %24 = arith.cmpi eq, %2, %23 : vector<22x128xi32>
    %25 = arith.ori %19, %24 : vector<22x128xi1>
    %26 = arith.extui %25 : vector<22x128xi1> to vector<22x128xi32>
    %27 = arith.sitofp %26 : vector<22x128xi32> to vector<22x128xf32>
    %c0_3 = arith.constant 0 : index
    %c0_4 = arith.constant 0 : index
    %28 = vector.load %arg3[%c0_3, %c0_4] : memref<5x3xf32, #tpu.memory_space<vmem>>, vector<5x3xf32>
    %cst = arith.constant dense<0.000000e+00> : vector<5x128xf32>
    %29 = tpu.matmul %28, %0, %cst {dimension_numbers = #tpu.dot_dimension_numbers<[1], [0], [0], [1], [0, 0, 1, 1], [], []>} : vector<5x3xf32>, vector<3x128xf32>, vector<5x128xf32> -> vector<5x128xf32>
    %c0_5 = arith.constant 0 : index
    %c0_6 = arith.constant 0 : index
    %30 = vector.load %arg4[%c0_5, %c0_6] : memref<5x22xf32, #tpu.memory_space<vmem>>, vector<5x22xf32>
    %cst_7 = arith.constant dense<0.000000e+00> : vector<5x128xf32>
    %31 = tpu.matmul %30, %27, %cst_7 {dimension_numbers = #tpu.dot_dimension_numbers<[1], [0], [0], [1], [0, 0, 1, 1], [], []>} : vector<5x22xf32>, vector<22x128xf32>, vector<5x128xf32> -> vector<5x128xf32>
    %32 = arith.addf %29, %31 : vector<5x128xf32>
    %c0_8 = arith.constant 0 : index
    %c0_9 = arith.constant 0 : index
    %33 = vector.load %arg5[%c0_8, %c0_9] : memref<5x1xf32, #tpu.memory_space<vmem>>, vector<5x1xf32>
    %34 = vector.broadcast %33 : vector<5x1xf32> to vector<5x128xf32>
    %35 = arith.addf %32, %34 : vector<5x128xf32>
    %cst_10 = arith.constant 0.000000e+00 : f32
    %36 = vector.broadcast %cst_10 : f32 to vector<5x128xf32>
    %37 = arith.maximumf %35, %36 : vector<5x128xf32>
    %c0_11 = arith.constant 0 : index
    %c0_12 = arith.constant 0 : index
    %38 = vector.load %arg6[%c0_11, %c0_12] : memref<3x5xf32, #tpu.memory_space<vmem>>, vector<3x5xf32>
    %cst_13 = arith.constant dense<0.000000e+00> : vector<3x128xf32>
    %39 = tpu.matmul %38, %37, %cst_13 {dimension_numbers = #tpu.dot_dimension_numbers<[1], [0], [0], [1], [0, 0, 1, 1], [], []>} : vector<3x5xf32>, vector<5x128xf32>, vector<3x128xf32> -> vector<3x128xf32>
    %c0_14 = arith.constant 0 : index
    %c0_15 = arith.constant 0 : index
    %40 = vector.load %arg7[%c0_14, %c0_15] : memref<3x1xf32, #tpu.memory_space<vmem>>, vector<3x1xf32>
    %41 = vector.broadcast %40 : vector<3x1xf32> to vector<3x128xf32>
    %42 = arith.addf %39, %41 : vector<3x128xf32>
    %cst_16 = arith.constant 0.000000e+00 : f32
    %43 = vector.broadcast %cst_16 : f32 to vector<3x128xf32>
    %44 = arith.maximumf %42, %43 : vector<3x128xf32>
    %c0_17 = arith.constant 0 : index
    %c0_18 = arith.constant 0 : index
    %45 = vector.load %arg8[%c0_17, %c0_18] : memref<1x3xf32, #tpu.memory_space<vmem>>, vector<1x3xf32>
    %cst_19 = arith.constant dense<0.000000e+00> : vector<1x128xf32>
    %46 = tpu.matmul %45, %44, %cst_19 {dimension_numbers = #tpu.dot_dimension_numbers<[1], [0], [0], [1], [0, 0, 1, 1], [], []>} : vector<1x3xf32>, vector<3x128xf32>, vector<1x128xf32> -> vector<1x128xf32>
    %c0_20 = arith.constant 0 : index
    %c0_21 = arith.constant 0 : index
    %47 = vector.load %arg9[%c0_20, %c0_21] : memref<1x1xf32, #tpu.memory_space<vmem>>, vector<1x1xf32>
    %48 = vector.broadcast %47 : vector<1x1xf32> to vector<1x128xf32>
    %49 = arith.addf %46, %48 : vector<1x128xf32>
    %c0_22 = arith.constant 0 : index
    %c0_23 = arith.constant 0 : index
    %50 = vector.load %arg10[%c0_22, %c0_23] : memref<1x128xf32, #tpu.memory_space<vmem>>, vector<1x128xf32>
    tpu.vector_store %arg10[%c0_22, %c0_23], %49 {strides = array<i32>} : memref<1x128xf32, #tpu.memory_space<vmem>>, vector<1x128xf32>,
    return
  }
  func.func @transform_0(%arg0: i32) -> (i32, i32) {
    %c0_i32 = arith.constant 0 : i32
    %c0_i32_0 = arith.constant 0 : i32
    return %c0_i32, %arg0 : i32, i32
  }
  func.func @transform_1(%arg0: i32) -> (i32, i32) {
    %c0_i32 = arith.constant 0 : i32
    %c0_i32_0 = arith.constant 0 : i32
    return %c0_i32, %arg0 : i32, i32
  }
  func.func @transform_2(%arg0: i32) -> (i32, i32) {
    %c0_i32 = arith.constant 0 : i32
    %c0_i32_0 = arith.constant 0 : i32
    %c0_i32_1 = arith.constant 0 : i32
    return %c0_i32, %c0_i32_0 : i32, i32
  }
  func.func @transform_3(%arg0: i32) -> (i32, i32) {
    %c0_i32 = arith.constant 0 : i32
    %c0_i32_0 = arith.constant 0 : i32
    %c0_i32_1 = arith.constant 0 : i32
    return %c0_i32, %c0_i32_0 : i32, i32
  }
  func.func @transform_4(%arg0: i32) -> (i32, i32) {
    %c0_i32 = arith.constant 0 : i32
    %c0_i32_0 = arith.constant 0 : i32
    %c0_i32_1 = arith.constant 0 : i32
    return %c0_i32, %c0_i32_0 : i32, i32
  }
  func.func @transform_5(%arg0: i32) -> (i32, i32) {
    %c0_i32 = arith.constant 0 : i32
    %c0_i32_0 = arith.constant 0 : i32
    %c0_i32_1 = arith.constant 0 : i32
    return %c0_i32, %c0_i32_0 : i32, i32
  }
  func.func @transform_6(%arg0: i32) -> (i32, i32) {
    %c0_i32 = arith.constant 0 : i32
    %c0_i32_0 = arith.constant 0 : i32
    %c0_i32_1 = arith.constant 0 : i32
    return %c0_i32, %c0_i32_0 : i32, i32
  }
  func.func @transform_7(%arg0: i32) -> (i32, i32) {
    %c0_i32 = arith.constant 0 : i32
    %c0_i32_0 = arith.constant 0 : i32
    %c0_i32_1 = arith.constant 0 : i32
    return %c0_i32, %c0_i32_0 : i32, i32
  }
  func.func @transform_8(%arg0: i32) -> (i32, i32) {
    %c0_i32 = arith.constant 0 : i32
    %c0_i32_0 = arith.constant 0 : i32
    %c0_i32_1 = arith.constant 0 : i32
    return %c0_i32, %c0_i32_0 : i32, i32
  }
  func.func @transform_9(%arg0: i32) -> (i32, i32) {
    %c0_i32 = arith.constant 0 : i32
    %c0_i32_0 = arith.constant 0 : i32
    return %c0_i32, %arg0 : i32, i32
  }
}

</mosaic_0001>

<bundles_post_ra>
// kernel: tpu_custom_call.1
= control target key start
LH: loop header
LB: loop body
LE: loop exit
PB: predicated region body
PF: predicated region fallthrough
CT: control target
= control target key end

     0   :  { %s367_s0 = inlined_call_operand.vmem [shape: f32[3,128], index: 0, kind: input, shape index: {}]   ;;  %s368_s1 = inlined_call_operand.vmem [shape: s32[4,128], index: 1, kind: input, shape index: {}]   ;;  %s369_s2 = inlined_call_operand.vmem [shape: f32[5,3], index: 2, kind: input, shape index: {}]   ;;  %s370_s3 = inlined_call_operand.vmem [shape: f32[5,22], index: 3, kind: input, shape index: {}]   ;;  %s371_s4 = inlined_call_operand.vmem [shape: f32[5,1], index: 4, kind: input, shape index: {}]   ;;  %s372_s5 = inlined_call_operand.vmem [shape: f32[3,5], index: 5, kind: input, shape index: {}]   ;;  %s373_s6 = inlined_call_operand.vmem [shape: f32[3,1], index: 6, kind: input, shape index: {}]   ;;  %s374_s7 = inlined_call_operand.vmem [shape: f32[1,3], index: 7, kind: input, shape index: {}]   ;;  %s375_s8 = inlined_call_operand.<no memory space> [shape: f32[1,1], index: 8, kind: input, shape index: {}]   ;;  %s376_s9 = inlined_call_operand.hbm [shape: f32[1,128], index: 9, kind: output, shape index: {}]  }
   0x1   :  { %v14_v0 = vstv %s375_s8 }
   0x2   :  { %15 = vst [vmem:[#allocation2] sm:$0x1] %v14_v0 }
   0x3   :  { %v36_v1 = vld [vmem:[%s368_s1] sm:$0xf]  ;;  %v37_v2 = vlaneseq  ;;  %vm378_vm0 = vcmask 1042432   ;;  %vm377_vm1 = vcmask 23552   ;;  %v273_v15 = vmov 0  }
   0x4   :  { %v45_v3 = vadd.s32 5, %v36_v1  ;;  %v53_v4 = vadd.s32 12, %v36_v1  ;;  %v61_v5 = vadd.s32 16, %v36_v1  ;;  %v35_v6 = vld [vmem:[%s367_s0] sm:$0x7]  ;;  %v41_v8 = vperm.slane %v36_v1, 0  ;;  %245 = vset.pattern.permute.xlu0 %v273_v15  ;;  %246 = vset.pattern.permute.xlu1 %v273_v15 }
   0x5   :  { %v38_v7 = vshrl.u32 %v37_v2, 7  ;;  %235 = vmatpush.msk.msra.mxu1 %vm378_vm0, %v35_v6  ;;  %v75_v12 = vld [vmem:[%s369_s2] sm:$0x1f] }
   0x6   :  { %v46_v9 = vperm.slane %v45_v3, 1  ;;  %v54_v10 = vperm.slane %v53_v4, 2  ;;  %v62_v11 = vperm.slane %v61_v5, 3  ;;  %236 = vmatmul.msk.f32.vlgmr.msra.gmra.mxu1 %vm377_vm1, %v75_v12  ;;  %v133_v16 = vld [vmem:[%s371_s4] sm:$0x1f] }
   0x7   :  { %v40_v13 = vadd.s32 16, %v38_v7  ;;  %v39_v14 = vadd.s32 8, %v38_v7  ;;  %vm42_vm2 = vcmp.eq.s32.totalorder %v38_v7, %v41_v8  ;;  %136 = vperm.xlu0 %245, %v133_v16  }
   0x8   :  { %vm47_vm3 = vcmp.eq.s32.totalorder %v38_v7, %v46_v9 }
   0x9   :  { %16 = vsyncpa [#allocation4], 0  ;;  %vm44_vm4 = vcmp.eq.s32.totalorder %v40_v13, %v41_v8  ;;  %vm49_vm5 = vcmp.eq.s32.totalorder %v40_v13, %v46_v9  ;;  %vm57_vm6 = vcmp.eq.s32.totalorder %v40_v13, %v54_v10  ;;  %vm65_vm7 = vcmp.eq.s32.totalorder %v40_v13, %v62_v11  ;;  %v142_v20 = vld [vmem:[%s373_s6] sm:$0x7]  ;;  %s219_s23 = sshll.u32 %s376_s9, 4  ;;  %s220_s23 = int_to_ptr.hbm [resolvable:$true] %s219_s23 }
   0xa   :  { %vm344_vm8 = vmor %vm42_vm2, %vm47_vm3  ;;  %v379_v17 = vmov 0  ;;  %vm43_vm10 = vcmp.eq.s32.totalorder %v39_v14, %v41_v8  ;;  %vm48_vm11 = vcmp.eq.s32.totalorder %v39_v14, %v46_v9  ;;  %vm81_vm13 = vcmask 1045504   ;;  %v76_v22 = vld [vmem:[%s370_s3] sm:$0x1f] }
   0xb   :  { %v380_v17 = vsel %vm344_vm8, 4294967295, %v379_v17  ;;  %vm52_vm9 = vmor %vm44_vm4, %vm49_vm5  ;;  %vm56_vm14 = vcmp.eq.s32.totalorder %v39_v14, %v54_v10  ;;  %vm64_vm1 = vcmp.eq.s32.totalorder %v39_v14, %v62_v11  ;;  %v274_v18 = vmov 0.0   ;;  %v141_v29 = vld [vmem:[%s372_s5] sm:$0x7]  ;;  %s276_s5 = smov [#allocation3]  }
   0xc   :  { %vm60_vm12 = vmor %vm52_vm9, %vm57_vm6  ;;  %vm55_vm2 = vcmp.eq.s32.totalorder %v38_v7, %v54_v10  ;;  %vm63_vm8 = vcmp.eq.s32.totalorder %v38_v7, %v62_v11  ;;  %v275_v21 = vmov 1.0   ;;  %vm381_vm5 = vnez %v380_v17  ;;  %v178_v30 = vld [vmem:[#allocation2] sm:$0x1]  ;;  %s217_s20 = sshll.u32 %s276_s5, 4  ;;  %s218_s20 = int_to_ptr.vmem [resolvable:$true] %s217_s20 }
   0xd   :  { %vm68_vm15 = vmor %vm60_vm12, %vm65_vm7  ;;  %vm77_vm7 = vcmask 179200   ;;  %181 = vperm.xlu1 %246, %v178_v30   ;;  %v177_v35 = vld [vmem:[%s374_s7] sm:$0x1] }
   0xe   :  { %v230_v19 = vsel %vm68_vm15, 1.0, %v274_v18  ;;  %vm51_vm0 = vmor %vm43_vm10, %vm48_vm11  ;;  %vm383_vm10 = vcmask 23552  }
   0xf   :  { %231 = vmatpush.msk.msra.mxu0 %vm81_vm13, %v230_v19  ;;  %vm59_vm3 = vmor %vm51_vm0, %vm56_vm14  ;;  %145 = vperm.xlu0 %245, %v142_v20   ;;  %vm152_vm0 = vcmask 1044480  }
  0x10   :  { %vm67_vm4 = vmor %vm59_vm3, %vm64_vm1  ;;  %vm148_vm1 = vcmask 39936  }
  0x11   :  { %232 = vmatpush.msk.msra.mxu0 %vm67_vm4, %v275_v21  ;;  %vm58_vm6 = vmor %vm381_vm5, %vm55_vm2 }
  0x12   :  { %vm66_vm9 = vmor %vm58_vm6, %vm63_vm8  ;;  %vm382_vm8 = vcmask 1042432  }
  0x13   :  { %233 = vmatpush.msk.msra.mxu0 %vm66_vm9, %v275_v21 }
  0x14   :  { %234 = vmatmul.msk.f32.vlgmr.msra.gmra.mxu0 %vm77_vm7, %v76_v22 }
  0x79   :  { %v137_v26 = vpop.permute.xlu0 %136 }
  0x7f   :  { %v182_v36 = vpop.permute.xlu1 %181 }
  0x80   :  { %v184_v37 = vperm.slane %v182_v36, 0 }
  0x81   :  { %v146_v31 = vpop.permute.xlu0 %145 }
  0x83   :  { %v130_v23 = vpop.f32.mrf.mxu1 }
  0x91   :  { %v102_v24 = vpop.f32.mrf.mxu0 }
  0x92   :  { %v131_v25 = vadd.f32 %v130_v23, %v102_v24 }
  0x94   :  { %v139_v27 = vadd.f32 %v137_v26, %v131_v25 }
  0x96   :  { %v140_v28 = vmax.f32 %v139_v27, 0.0 }
  0x98   :  { %237 = vmatpush.msk.msra.mxu2 %vm152_vm0, %v140_v28 }
  0x99   :  { %238 = vmatmul.msk.f32.vlgmr.msra.gmra.mxu2 %vm148_vm1, %v141_v29 }
 0x11c   :  { %v173_v32 = vpop.f32.mrf.mxu2 }
 0x11d   :  { %v174_v33 = vadd.f32 %v173_v32, %v146_v31 }
 0x11f   :  { %v176_v34 = vmax.f32 %v174_v33, 0.0 }
 0x121   :  { %239 = vmatpush.msk.msra.mxu3 %vm382_vm8, %v176_v34 }
 0x122   :  { %240 = vmatmul.msk.f32.vlgmr.msra.gmra.mxu3 %vm383_vm10, %v177_v35 }
 0x1a5   :  { %v208_v38 = vpop.f32.mrf.mxu3 }
 0x1a6   :  { %v209_v39 = vadd.f32 %v208_v38, %v184_v37 }
 0x1a8   :  { %211 = vst [vmem:[#allocation3] sm:$0x1] %v209_v39 }
 0x1a9   :  { %222 = dma.vmem_to_hbm [thread:$0]  %s218_s20, 16, %s220_s23, [#allocation4]  }
 0x1aa   :  { %271 = dma.done.wait [#allocation4], 16  }
 0x1ab   :  { %272 = vsyncadd [#allocation4], 4294967280 }
 0x1ac   :  { %227 = vsyncpa [#allocation4], 1 }

</bundles_post_ra>
